<compile_context>
chip_gen: v7x
topology: tpu7x:2x2x1
jax: 0.10.0
libtpu: 0.0.40
codegen_flags: <defaults>
</compile_context>

<pallas_src>
import math

import jax
import jax.numpy as jnp
from jax.experimental import pallas as pl
from jax.experimental.pallas import tpu as pltpu


def tcl_kernel(x_ref, w_ref, b_ref, o_ref):
    # x_ref: (t_pad, tile_nw, C_in)     bf16, zero-padded along time, lane-dense C
    # w_ref: (C_in, K*C_out)            bf16, tap k in columns [k*C_out, (k+1)*C_out)
    # b_ref: (1, C_out)                 f32
    # o_ref: (t_out, tile_nw, C_out)    f32
    t_out, tile_nw, c_out = o_ref.shape
    t_pad, _, c_in = x_ref.shape
    k_taps = w_ref.shape[1] // c_out

    # One fused MXU matmul over all taps (384-wide output on the demo shape);
    # the (t_pad, tile_nw) -> rows merge is layout-free because tile_nw % 8 == 0.
    x_flat = x_ref[...].reshape(t_pad * tile_nw, c_in)
    taps = jnp.dot(x_flat, w_ref[...], preferred_element_type=jnp.float32)
    taps = taps.reshape(t_pad, tile_nw, k_taps * c_out)

    # Combine taps: leading-axis time shifts (cheap, no sublane relayout) and
    # lane-aligned 128-wide column groups; accumulator starts from the bias.
    acc = jnp.broadcast_to(b_ref[...], (t_out, tile_nw, c_out))
    for k in range(k_taps):
        acc = acc + taps[k:k + t_out, :, k * c_out:(k + 1) * c_out]
    o_ref[...] = acc.astype(o_ref.dtype)


def _round_up(x, m):
    return (x + m - 1) // m * m


def _pick_tile_nw(nw8, t_pad, t_out, c, k_taps, budget):
    """Largest multiple-of-8 sequence tile whose real VMEM footprint fits
    `budget`, while keeping >=4 grid steps (>=2 per v7x TensorCore) when there
    is enough work to pipeline."""
    per_row = (t_pad * c * 2 * 2            # bf16 input tile, double-buffered
               + t_out * c * 4 * 2          # f32 output tile, double-buffered
               + t_pad * k_taps * c * 4     # f32 fused-tap matmul result
               + t_out * c * 4)             # f32 accumulator
    usable = max(budget - (2 << 20), per_row * 8)   # reserve for weights/bias/misc
    fit = max(8, usable // per_row // 8 * 8)
    depth = max(8, nw8 // 4 // 8 * 8)        # aim for >= 4 grid steps
    tile = max(8, min(fit, depth, nw8))
    # re-balance: same number of steps, minimal nw padding
    steps = -(-nw8 // tile)
    tile = min(tile, _round_up(-(-nw8 // steps), 8))
    return max(8, tile)


def tcl_forward(x, weight, bias, *, tile_nw=None, interpret=False):
    """x: (N, C, T, W) f32.  weight: (C, C, K, 1) torch layout.  bias: (C,)."""
    n, c, t, w = x.shape
    c_out, c_in, k_taps, kw = weight.shape
    assert kw == 1 and c_in == c and c_out == c

    pad = k_taps // 2
    t_out = t + 2 * pad - k_taps + 1          # PyTorch Conv2d output height
    t_pad = t + 2 * pad
    nw = n * w

    # (T_pad, NW, C) layout, bf16 operands (transpose + pad + cast fuse into a
    # single XLA relayout pass over x).
    x_seq = jnp.transpose(x, (2, 0, 3, 1)).reshape(t, nw, c)
    x_pad = jnp.pad(x_seq, ((pad, pad), (0, 0), (0, 0))).astype(jnp.bfloat16)

    # W_all[ci, k*C + co] == torch_weight[co, ci, k, 0]
    w_all = jnp.transpose(weight[:, :, :, 0], (1, 2, 0)).reshape(c_in, k_taps * c_out)
    w_all = w_all.astype(jnp.bfloat16)
    b_row = bias.reshape(1, c_out).astype(jnp.float32)

    # Generation-aware VMEM budget (v7x: 64 MiB/TC, v5e/v6e: 128 MiB).
    try:
        vmem_cap = int(pltpu.get_tpu_info().vmem_capacity_bytes)
    except Exception:
        vmem_cap = 64 << 20
    budget = max(min(vmem_cap // 2, 48 << 20), 8 << 20)

    nw8 = _round_up(nw, 8)
    if tile_nw is None:
        tile_nw = _pick_tile_nw(nw8, t_pad, t_out, c, k_taps, budget)
    assert tile_nw % 8 == 0
    nw_total = _round_up(nw8, tile_nw)
    if nw_total != nw:
        x_pad = jnp.pad(x_pad, ((0, 0), (0, nw_total - nw), (0, 0)))
    grid = (nw_total // tile_nw,)

    out = pl.pallas_call(
        tcl_kernel,
        out_shape=jax.ShapeDtypeStruct((t_out, nw_total, c_out), jnp.float32),
        grid_spec=pltpu.PrefetchScalarGridSpec(
            num_scalar_prefetch=0,
            grid=grid,
            in_specs=[
                pl.BlockSpec((t_pad, tile_nw, c), lambda i: (0, i, 0)),
                pl.BlockSpec((c_in, k_taps * c_out), lambda i: (0, 0)),   # resident
                pl.BlockSpec((1, c_out), lambda i: (0, 0)),               # resident
            ],
            out_specs=pl.BlockSpec((t_out, tile_nw, c_out), lambda i: (0, i, 0)),
        ),
        compiler_params=pltpu.CompilerParams(
            dimension_semantics=("parallel",),
            vmem_limit_bytes=int(budget),
        ),
        interpret=interpret,
    )(x_pad, w_all, b_row)

    out = out[:, :nw, :]
    # back to the PyTorch NCHW layout: (N, C_out, T_out, W)
    return jnp.transpose(out.reshape(t_out, n, w, c_out), (1, 3, 0, 2))


def init_params(key, dim, conv_size):
    """kaiming_normal_ weights (fan_in, gain=sqrt(2)); PyTorch-default bias."""
    kw_key, kb_key = jax.random.split(key)
    fan_in = dim * conv_size * 1
    std = math.sqrt(2.0) / math.sqrt(fan_in)
    weight = std * jax.random.normal(kw_key, (dim, dim, conv_size, 1), jnp.float32)
    bound = 1.0 / math.sqrt(fan_in)
    bias = jax.random.uniform(kb_key, (dim,), jnp.float32, -bound, bound)
    return weight, bias


def reference(x, weight, bias, pad):
    out = jax.lax.conv_general_dilated(
        x, weight, window_strides=(1, 1),
        padding=((pad, pad), (0, 0)),
        dimension_numbers=("NCHW", "OIHW", "NCHW"))
    return out + bias.reshape(1, -1, 1, 1)


if __name__ == "__main__":
    key = jax.random.PRNGKey(0)
    k_x, k_p = jax.random.split(key)

    # small but lane-dense shapes: dim=128 fills the 128-lane vregs / MXU width
    batch, dim, seq_len, width = 2, 128, 16, 8
    conv_size = 3

    x = jax.random.normal(k_x, (batch, dim, seq_len, width), jnp.float32)
    weight, bias = init_params(k_p, dim, conv_size)

    y = jax.block_until_ready(tcl_forward(x, weight, bias))

    y_ref = reference(x, weight, bias, conv_size // 2)
    assert y.shape == y_ref.shape
    # bf16 MXU operands with f32 accumulation vs an all-f32 reference.
    assert jnp.allclose(y, y_ref, atol=5e-2, rtol=5e-2), "mismatch vs JAX conv reference"

    print("KERNEL_OK")
</pallas_src>

<mosaic_0001>
module attributes {stable_mosaic.version = 11 : i64} {
  func.func @tcl_kernel(%arg0: i32, %arg1: memref<18x8x128xbf16, #tpu.memory_space<vmem>>, %arg2: memref<128x384xbf16, #tpu.memory_space<vmem>>, %arg3: memref<1x128xf32, #tpu.memory_space<vmem>>, %arg4: memref<16x8x128xf32, #tpu.memory_space<vmem>>) attributes {dimension_semantics = [#tpu.dimension_semantics<parallel>], iteration_bounds = array<i64: 2>, scalar_prefetch = 0 : i64, scratch_operands = 0 : i64, tpu.core_type = #tpu.core_type<tc>, window_params = [{transform_indices = @transform_0, window_bounds = array<i64: 18, 8, 128>}, {pipeline_mode = #tpu.pipeline_mode<synchronous>, transform_indices = @transform_1, window_bounds = array<i64: 128, 384>}, {pipeline_mode = #tpu.pipeline_mode<synchronous>, transform_indices = @transform_2, window_bounds = array<i64: 1, 128>}, {transform_indices = @transform_3, window_bounds = array<i64: 16, 8, 128>}]} {
    %c0 = arith.constant 0 : index
    %c0_0 = arith.constant 0 : index
    %c0_1 = arith.constant 0 : index
    %0 = vector.load %arg1[%c0, %c0_0, %c0_1] : memref<18x8x128xbf16, #tpu.memory_space<vmem>>, vector<18x8x128xbf16>
    %1 = vector.shape_cast %0 : vector<18x8x128xbf16> to vector<144x128xbf16>
    %c0_2 = arith.constant 0 : index
    %c0_3 = arith.constant 0 : index
    %2 = vector.load %arg2[%c0_2, %c0_3] : memref<128x384xbf16, #tpu.memory_space<vmem>>, vector<128x384xbf16>
    %cst = arith.constant dense<0.000000e+00> : vector<144x384xf32>
    %3 = tpu.matmul %1, %2, %cst {dimension_numbers = #tpu.dot_dimension_numbers<[1], [0], [0], [1], [0, 0, 1, 1], [], []>} : vector<144x128xbf16>, vector<128x384xbf16>, vector<144x384xf32> -> vector<144x384xf32>
    %4 = vector.shape_cast %3 : vector<144x384xf32> to vector<18x8x384xf32>
    %c0_4 = arith.constant 0 : index
    %c0_5 = arith.constant 0 : index
    %5 = vector.load %arg3[%c0_4, %c0_5] : memref<1x128xf32, #tpu.memory_space<vmem>>, vector<1x128xf32>
    %6 = vector.shape_cast %5 : vector<1x128xf32> to vector<1x1x128xf32>
    %7 = vector.broadcast %6 : vector<1x1x128xf32> to vector<16x8x128xf32>
    %8 = vector.extract_strided_slice %4 {offsets = [0, 0, 0], sizes = [16, 8, 128], strides = [1, 1, 1]} : vector<18x8x384xf32> to vector<16x8x128xf32>
    %9 = arith.addf %7, %8 : vector<16x8x128xf32>
    %10 = vector.extract_strided_slice %4 {offsets = [1, 0, 128], sizes = [16, 8, 128], strides = [1, 1, 1]} : vector<18x8x384xf32> to vector<16x8x128xf32>
    %11 = arith.addf %9, %10 : vector<16x8x128xf32>
    %12 = vector.extract_strided_slice %4 {offsets = [2, 0, 256], sizes = [16, 8, 128], strides = [1, 1, 1]} : vector<18x8x384xf32> to vector<16x8x128xf32>
    %13 = arith.addf %11, %12 : vector<16x8x128xf32>
    %c0_6 = arith.constant 0 : index
    %c0_7 = arith.constant 0 : index
    %c0_8 = arith.constant 0 : index
    %14 = vector.load %arg4[%c0_6, %c0_7, %c0_8] : memref<16x8x128xf32, #tpu.memory_space<vmem>>, vector<16x8x128xf32>
    tpu.vector_store %arg4[%c0_6, %c0_7, %c0_8], %13 {strides = array<i32>} : memref<16x8x128xf32, #tpu.memory_space<vmem>>, vector<16x8x128xf32>,
    return
  }
  func.func @transform_0(%arg0: i32) -> (i32, i32, i32) {
    %c0_i32 = arith.constant 0 : i32
    %c0_i32_0 = arith.constant 0 : i32
    %c0_i32_1 = arith.constant 0 : i32
    return %c0_i32, %arg0, %c0_i32_0 : i32, i32, i32
  }
  func.func @transform_1(%arg0: i32) -> (i32, i32) {
    %c0_i32 = arith.constant 0 : i32
    %c0_i32_0 = arith.constant 0 : i32
    %c0_i32_1 = arith.constant 0 : i32
    return %c0_i32, %c0_i32_0 : i32, i32
  }
  func.func @transform_2(%arg0: i32) -> (i32, i32) {
    %c0_i32 = arith.constant 0 : i32
    %c0_i32_0 = arith.constant 0 : i32
    %c0_i32_1 = arith.constant 0 : i32
    return %c0_i32, %c0_i32_0 : i32, i32
  }
  func.func @transform_3(%arg0: i32) -> (i32, i32, i32) {
    %c0_i32 = arith.constant 0 : i32
    %c0_i32_0 = arith.constant 0 : i32
    %c0_i32_1 = arith.constant 0 : i32
    return %c0_i32, %arg0, %c0_i32_0 : i32, i32, i32
  }
}

</mosaic_0001>

<bundles_post_ra>
// kernel: tpu_custom_call.1
= control target key start
LH: loop header
LB: loop body
LE: loop exit
PB: predicated region body
PF: predicated region fallthrough
CT: control target
= control target key end

     0   :  { %8 = vsyncpa [#allocation3], 0  ;;  %s1502_s0 = inlined_call_operand.hbm [shape: bf16[18,16,128], index: 0, kind: input, shape index: {}]   ;;  %s1503_s1 = inlined_call_operand.hbm [shape: bf16[128,384], index: 1, kind: input, shape index: {}]   ;;  %s1504_s2 = inlined_call_operand.vmem [shape: f32[1,128], index: 2, kind: input, shape index: {}]   ;;  %s1505_s3 = inlined_call_operand.hbm [shape: f32[16,16,128], index: 3, kind: output, shape index: {}]  }
   0x1   :  { %10 = vsyncpa [#allocation3 + $0x1], 0 }
   0x2   :  { %11 = vsyncpa [#allocation6], 0 }
   0x3   :  { %12 = vsyncpa [#allocation4], 0 }
   0x4   :  { %14 = vsyncpa [#allocation4 + $0x1], 0  ;;  %s1215_s12 = smov 0   ;;  %s1217_s13 = smov 0  }
   0x5   :  { %s1219_s14 = smov 0   ;;  %s1221_s15 = smov 0  }
   0x6 LB: > { %s1236_s16 = sadd.s32 4294967295, %s1179_s15   ;;  %s825_s17 = sadd.s32 4294967294, %s1179_s15   ;;  %s1179_s15 = sphi %s1221_s15, %s1529_s15   ;;  %s1175_s14 = sphi %s1219_s14, %s1528_s14   ;;  %s1171_s13 = sphi %s1217_s13, %s1527_s13   ;;  %s1167_s12 = sphi %s1215_s12, %s1526_s12  }
   0x7   : > { %s1240_s18 = sadd.s32 1, %s1179_s15   ;;  %s27_s19 = sadd.s32 1, %s1175_s14 }
   0x8   : > { %s24_s20 = ssub.s32 %s1179_s15, %s1240_s18  ;;  %p34_p0 = scmp.ne.s32.totalorder %s1175_s14, %s1171_s13 }
   0x9   : > { %p25_p1 = scmp.eq.s32.totalorder %s24_s20, 0  ;;  %p35_p2 = scmp.eq.s32.totalorder %s1179_s15, 0 }
   0xa   : > { %p40_p3 = scmp.ne.s32.totalorder %s1171_s13, %s1167_s12  ;;  %p1506_p4 = scmp.eq.s32.totalorder %s1236_s16, 0 }
   0xb   : > { %s1252_s21 = scalar_select %p25_p1, %s1175_s14, %s27_s19  }
   0xc   : > { %p1254_p5 = por %p35_p2, %p34_p0  ;;  %p1260_p6 = por %p1506_p4, %p40_p3 }
   0xd   : > { %p106_p7 = scmp.eq.s32.totalorder %s1236_s16, 1  ;;  %p112_p8 = scmp.eq.s32.totalorder %s825_s17, 1 }
   0xe   : > { %s1510_s22 = scalar_select %p1254_p5, 1, 0 }
   0xf   : > { %s1511_s23 = scalar_select %p1260_p6, 1, 0 }
  0x10   : > { %p826_p9 = scmp.ge.s32.totalorder %s1179_s15, 1  ;;  %p119_p10 = scmp.lt.s32.totalorder %s1179_s15, 3 }
  0x11   : > { %p1267_p11 = por %p106_p7, %p34_p0  ;;  %p1271_p12 = por %p112_p8, %p40_p3 }
  0x12   : > { %p1275_p13 = pnand %p826_p9, %p119_p10  ;;  %s1181_s27 = smov [#allocation5]  }
  0x13   : > { %s1512_s24 = scalar_select %p1267_p11, 1, 0 }
  0x14   : > { %s1513_s25 = scalar_select %p1271_p12, 1, 0 }
  0x15   : > { %s1514_s26 = scalar_select %p1275_p13, 1, 0 }
  0x16   : > { %p950_p1 = pneg %p1275_p13  ;;  %s131_s28 = sshll.u32 %s1181_s27, 4  ;;  %s132_s28 = int_to_ptr.vmem [resolvable:$true] %s131_s28 }
  0x17   : > { %s148_s30 = sand.u32 1, %s1175_s14   ;;  %s1051_s6 = scalar_lea.hbm %s1503_s1, 3072 }
  0x18   : > { %p1283_p2 = pnand %p950_p1, %p1506_p4  ;;  %p1052_p7 = scmp.ne.s32.totalorder %s1503_s1, %s1051_s6 }
  0x19   : > { %p1058_p1 = scmp.lt.u32.totalorder %s1051_s6, %s1503_s1 }
  0x1a   : > { %p1053_p8 = pneg %p1283_p2 }
  0x1c   : > { %p1054_p9 = pnand %p1053_p8, %p1052_p7 }
  0x1e   : > { %p1055_p10 = pneg %p1054_p9 }
  0x20   : > { %p1060_p4 = pnand %p1058_p1, %p1055_p10 }
  0x22   : > { %1063 = shalt.err (!%p1060_p4)
}
  0x23   : > { %s1064_s11 = scalar_lea.vmem %s132_s28, 3072  ;;  %p1072_p11 = scmp.lt.s32.totalorder %s132_s28, %s132_s28 }
  0x24   : > { %p1065_p0 = scmp.ne.s32.totalorder %s132_s28, %s1064_s11  ;;  %p1073_p6 = scmp.lt.s32.totalorder %s1064_s11, %s1064_s11 }
  0x26   : > { %p1067_p3 = pnand %p1065_p0, %p1053_p8  ;;  %p1074_p13 = por %p1073_p6, %p1072_p11 }
  0x28   : > { %p1068_p12 = pneg %p1067_p3 }
  0x2a   : > { %p1075_p5 = pnand %p1074_p13, %p1068_p12 }
  0x2c   : > { %1078 = shalt.err (!%p1075_p5)
}
  0x2d   : > { %s1182_s17 = smov 192   ;;  %s1183_s19 = smov 12  }
  0x2e   : > { %953 = dma.hbm_to_vmem [thread:$0]  (!%p1283_p2), %s1503_s1, 3072, %s132_s28, [#allocation6], %s1182_s17, %s1182_s17, %s1183_s19  }
  0x2f   : > { %p1516_p4 = scmp.ne.s32.totalorder %s1510_s22, 0  ;;  %p1517_p7 = scmp.lt.s32.totalorder %s1179_s15, 2 }
  0x30   : > { %s940_s5 = smul.u32 72, %s148_s30  ;;  %s829_s6 = sshll.u32 %s1179_s15, 6 }
  0x31   : > { %p1310_p0 = pnand %p1517_p7, %p1516_p4  ;;  %s1318_s9 = scalar_lea.hbm %s1502_s0, %s829_s6 }
  0x32   : > { %s152_s28 = scalar_lea.vmem [#allocation2], %s940_s5  ;;  %s1322_s29 = scalar_lea.sflag [#allocation3], %s148_s30 }
  0x33   : > { %s158_s22 = sshll.u32 %s152_s28, 4  ;;  %s1079_s10 = scalar_lea.hbm %s1318_s9, 1152  ;;  %s1320_s22 = int_to_ptr.vmem [resolvable:$true] %s158_s22 }
  0x34   : > { %p1080_p5 = scmp.ne.s32.totalorder %s1318_s9, %s1079_s10  ;;  %p1081_p6 = pneg %p1310_p0 }
  0x35   : > { %s1084_s19 = scalar_lea.hbm %s1502_s0, 2304  ;;  %p1085_p13 = scmp.lt.u32.totalorder %s1318_s9, %s1502_s0 }
  0x36   : > { %p1082_p11 = pnand %p1081_p6, %p1080_p5  ;;  %p1086_p2 = scmp.lt.u32.totalorder %s1084_s19, %s1079_s10 }
  0x37   : > { %p1088_p8 = scmp.lt.u32.totalorder %s1079_s10, %s1318_s9 }
  0x38   : > { %p1083_p12 = pneg %p1082_p11  ;;  %p1087_p3 = por %p1086_p2, %p1085_p13 }
  0x3a   : > { %p1089_p9 = por %p1088_p8, %p1087_p3 }
  0x3c   : > { %p1090_p10 = pnand %p1089_p9, %p1083_p12 }
  0x3e   : > { %1093 = shalt.err (!%p1090_p10)
}
  0x3f   : > { %s1094_s30 = scalar_lea.vmem %s1320_s22, 1152  ;;  %s1184_s5 = smov [#allocation2]  }
  0x40   : > { %p1095_p1 = scmp.ne.s32.totalorder %s1320_s22, %s1094_s30  ;;  %s1099_s6 = sshll.u32 %s1184_s5, 4  ;;  %s1100_s6 = int_to_ptr.vmem [resolvable:$false] %s1099_s6 }
  0x41   : > { %s1101_s7 = scalar_lea.vmem %s1100_s6, 2304  ;;  %p1102_p5 = scmp.lt.s32.totalorder %s1320_s22, %s1100_s6 }
  0x42   : > { %p1097_p4 = pnand %p1095_p1, %p1081_p6  ;;  %p1103_p11 = scmp.lt.s32.totalorder %s1101_s7, %s1094_s30 }
  0x44   : > { %p1098_p7 = pneg %p1097_p4  ;;  %p1104_p13 = por %p1103_p11, %p1102_p5 }
  0x46   : > { %p1105_p2 = pnand %p1104_p13, %p1098_p7 }
  0x48   : > { %1108 = shalt.err (!%p1105_p2)
}
  0x49   : > { %s1185_s8 = smov 128   ;;  %s1186_s28 = smov 64  }
  0x4a   : > { %s1187_s10 = smov 4   ;;  %p1519_p6 = scmp.ne.s32.totalorder %s1514_s26, 0 }
  0x4b   : > { %957 = dma.hbm_to_vmem [thread:$0]  (!%p1310_p0), %s1318_s9, 1152, %s1320_s22, %s1322_s29, %s1185_s8, %s1186_s28, %s1187_s10  }
  0x4c   : > { %170 = sbr.rel (%p1519_p6) target bundleno = 418 (0x1a2), region = 32  ;;  %s1353_s11 = sand.u32 (!%p1519_p6), 1, %s1171_s13  }
  0x4d   : > { %s941_s17 = smul.u32 (!%p1519_p6), 72, %s1353_s11  ;;  %s173_s19 = scalar_lea.sflag (!%p1519_p6), [#allocation3], %s1353_s11 }
  0x4e   : > { %p1520_p12 = scmp.ne.s32.totalorder (!%p1519_p6), %s1511_s23, 0 }
  0x4f   : > { %s1357_s20 = scalar_lea.vmem (!%p1519_p6), [#allocation2], %s941_s17 }
  0x53   : > { %1154 = dma.done.wait (%p1520_p12), %s173_s19, 1152  }
  0x54   : > { %1156 = vsyncadd (%p1520_p12), %s173_s19, 4294966144  ;;  %p1521_p0 = scmp.eq.s32.totalorder %s1236_s16, 0 }
  0x56   : > { %1158 = dma.done.wait (%p1521_p0), [#allocation6], 3072   ;;  %p1522_p3 = pmov %p1521_p0 }
  0x57   : > { %v1188_v0 = vmov 0.0   ;;  %vm1189_vm0 = vmmov 0   ;;  %v1190_v1 = vmov 0   ;;  %v1010_v2 = vld [vmem:[#allocation5 + $0x4] ss:$12 sps:$4 sm:$0xff]   ;;  %s832_s4 = sshll.u32 %s1353_s11, 7 }
  0x58   : > { %1160 = vsyncadd (%p1522_p3), [#allocation6], 4294964224  ;;  %888 = vmatprep.subr.bf16.mxu1 %v1188_v0  ;;  %904 = vmatprep.mubr.msk.bf16.mxu1 %vm1189_vm0, %v1188_v0  ;;  %v1012_v3 = vld [vmem:[#allocation5 + $0x8] ss:$12 sps:$4 sm:$0xff]   ;;  %v1013_v4 = vld [vmem:[#allocation5] ss:$12 sps:$4 sm:$0xff]  }
  0x59   : > { %468 = vmatprep.mubr.bf16.mxu0 %v1190_v1  ;;  %436 = vmatprep.subr.bf16.mxu0 %v1010_v2  ;;  %v1014_v5 = vld [vmem:[#allocation5 + $0x1c] ss:$12 sps:$4 sm:$0xff]   ;;  %v1016_v6 = vld [vmem:[#allocation5 + $0x20] ss:$12 sps:$4 sm:$0xff]   ;;  %v1017_v7 = vld [vmem:[#allocation5 + $0x18] ss:$12 sps:$4 sm:$0xff]  }
  0x5a   : > { %889 = vmatpush3.bf16.msra.mxu1 %v1012_v3  ;;  %437 = vmatpush1.bf16.msra.mxu0 %v1013_v4  ;;  %v1018_v8 = vld [vmem:[#allocation5 + $0x34] ss:$12 sps:$4 sm:$0xff]   ;;  %v1020_v9 = vld [vmem:[#allocation5 + $0x38] ss:$12 sps:$4 sm:$0xff]   ;;  %v1021_v10 = vld [vmem:[#allocation5 + $0x30] ss:$12 sps:$4 sm:$0xff]  }
  0x5b   : > { %890 = vmatprep.subr.bf16.mxu1 %v1188_v0  ;;  %438 = vmatprep.subr.bf16.mxu0 %v1014_v5  ;;  %v1022_v11 = vld [vmem:[#allocation5 + $0x4c] ss:$12 sps:$4 sm:$0xff]   ;;  %v1024_v12 = vld [vmem:[#allocation5 + $0x50] ss:$12 sps:$4 sm:$0xff]   ;;  %v1025_v13 = vld [vmem:[#allocation5 + $0x48] ss:$12 sps:$4 sm:$0xff]  }
  0x5c   : > { %v1026_v14 = vld [vmem:[#allocation5 + $0x64] ss:$12 sps:$4 sm:$0xff]   ;;  %v1028_v15 = vld [vmem:[#allocation5 + $0x68] ss:$12 sps:$4 sm:$0xff]   ;;  %v1029_v16 = vld [vmem:[#allocation5 + $0x60] ss:$12 sps:$4 sm:$0xff]  }
  0x5d   : > { %v1030_v17 = vld [vmem:[#allocation5 + $0x7c] ss:$12 sps:$4 sm:$0xff]   ;;  %v1032_v18 = vld [vmem:[#allocation5 + $0x80] ss:$12 sps:$4 sm:$0xff]   ;;  %v1033_v19 = vld [vmem:[#allocation5 + $0x78] ss:$12 sps:$4 sm:$0xff]  }
  0x5e   : > { %891 = vmatpush3.bf16.msra.mxu1 %v1016_v6  ;;  %439 = vmatpush1.bf16.msra.mxu0 %v1017_v7  ;;  %v1034_v20 = vld [vmem:[#allocation5 + $0x94] ss:$12 sps:$4 sm:$0xff]   ;;  %v1036_v21 = vld [vmem:[#allocation5 + $0x98] ss:$12 sps:$4 sm:$0xff]   ;;  %v1037_v22 = vld [vmem:[#allocation5 + $0x90] ss:$12 sps:$4 sm:$0xff]  }
  0x5f   : > { %892 = vmatprep.subr.bf16.mxu1 %v1188_v0  ;;  %440 = vmatprep.subr.bf16.mxu0 %v1018_v8  ;;  %v1038_v23 = vld [vmem:[#allocation5 + $0xac] ss:$12 sps:$4 sm:$0xff]   ;;  %v1040_v24 = vld [vmem:[#allocation5 + $0xb0] ss:$12 sps:$4 sm:$0xff]   ;;  %v1041_v25 = vld [vmem:[#allocation5 + $0xa8] ss:$12 sps:$4 sm:$0xff]  }
  0x60   : > { %v1042_v26 = vld [vmem:[%s1357_s20] sm:$0xff]   ;;  %v1043_v27 = vld [vmem:[%s1357_s20 + $0x8] sm:$0xff]   ;;  %v1044_v28 = vld [vmem:[%s1357_s20 + $0x10] sm:$0xff]   ;;  %s1420_s9 = scalar_lea.vmem [#allocation7], %s832_s4  ;;  %s868_s22 = sshll.u32 %s1236_s16, 7 }
  0x61   : > { %v1045_v29 = vld [vmem:[%s1357_s20 + $0x18] sm:$0xff]   ;;  %v1046_v30 = vld [vmem:[%s1357_s20 + $0x20] sm:$0xff]   ;;  %v1047_v31 = vld [vmem:[%s1357_s20 + $0x28] sm:$0xff]   ;;  %s742_s29 = sshll.u32 %s1420_s9, 4  ;;  %s1455_s5 = scalar_lea.hbm %s1505_s3, %s868_s22  ;;  %s1457_s29 = int_to_ptr.vmem [resolvable:$true] %s742_s29 }
  0x62   : > { %893 = vmatpush3.bf16.msra.mxu1 %v1020_v9  ;;  %441 = vmatpush1.bf16.msra.mxu0 %v1021_v10  ;;  %v1048_v32 = vld [vmem:[%s1357_s20 + $0x30] sm:$0xff]   ;;  %v1049_v33 = vld [vmem:[%s1357_s20 + $0x38] sm:$0xff]   ;;  %v1050_v34 = vld [vmem:[%s1357_s20 + $0x40] sm:$0xff]   ;;  %s730_s16 = scalar_lea.sflag [#allocation4], %s1353_s11  ;;  %s1109_s6 = scalar_lea.vmem %s1457_s29, 2048 }
  0x63   : > { %894 = vmatprep.subr.bf16.mxu1 %v1188_v0  ;;  %442 = vmatprep.subr.bf16.mxu0 %v1022_v11  ;;  %v1414_v35 = vld [vmem:[%s1504_s2] ss:$0 sm:$0xff]  ;;  %p1110_p8 = scmp.ne.s32.totalorder %s1457_s29, %s1109_s6  ;;  %p1523_p9 = scmp.ne.s32.totalorder %s1512_s24, 0 }
  0x64   : > { %s1191_s7 = smov [#allocation7]  }
  0x65   : > { %p1111_p10 = pnand %p1110_p8, %p1523_p9  ;;  %s1113_s8 = sshll.u32 %s1191_s7, 4  ;;  %s1114_s8 = int_to_ptr.vmem [resolvable:$false] %s1113_s8 }
  0x66   : > { %895 = vmatpush3.bf16.msra.mxu1 %v1024_v12  ;;  %443 = vmatpush1.bf16.msra.mxu0 %v1025_v13  ;;  %s1115_s28 = scalar_lea.vmem %s1114_s8, 4096  ;;  %p1116_p4 = scmp.lt.s32.totalorder %s1457_s29, %s1114_s8 }
  0x67   : > { %896 = vmatprep.subr.bf16.mxu1 %v1188_v0  ;;  %444 = vmatprep.subr.bf16.mxu0 %v1026_v14  ;;  %p1112_p1 = pneg %p1111_p10  ;;  %p1117_p7 = scmp.lt.s32.totalorder %s1115_s28, %s1109_s6 }
  0x69   : > { %p1118_p5 = por %p1117_p7, %p1116_p4 }
  0x6a   : > { %897 = vmatpush3.bf16.msra.mxu1 %v1028_v15  ;;  %445 = vmatpush1.bf16.msra.mxu0 %v1029_v16 }
  0x6b   : > { %898 = vmatprep.subr.bf16.mxu1 %v1188_v0  ;;  %446 = vmatprep.subr.bf16.mxu0 %v1030_v17  ;;  %p1119_p11 = pnand %p1118_p5, %p1112_p1 }
  0x6e   : > { %899 = vmatpush3.bf16.msra.mxu1 %v1032_v18  ;;  %447 = vmatpush1.bf16.msra.mxu0 %v1033_v19 }
  0x6f   : > { %900 = vmatprep.subr.bf16.mxu1 %v1188_v0  ;;  %448 = vmatprep.subr.bf16.mxu0 %v1034_v20 }
  0x72   : > { %901 = vmatpush3.bf16.msra.mxu1 %v1036_v21  ;;  %449 = vmatpush1.bf16.msra.mxu0 %v1037_v22 }
  0x73   : > { %902 = vmatprep.subr.bf16.mxu1 %v1188_v0  ;;  %450 = vmatprep.subr.bf16.mxu0 %v1038_v23 }
  0x76   : > { %903 = vmatpush3.bf16.msra.mxu1 %v1040_v24  ;;  %451 = vmatpush1.bf16.msra.mxu0 %v1041_v25 }
  0x79   : > { %905 = vmatmul.mubr.bf16.vlgmr.msra.gmra.mrb[0].mxu1 %v1042_v26  ;;  %469 = vmatmul.mubr.bf16.vlgmr.msra.gmra.mrb[0].mxu0 %v1042_v26 }
  0x7a   : > { %908 = vmatprep.mubr.msk.bf16.mxu1 %vm1189_vm0, %v1188_v0  ;;  %477 = vmatprep.mubr.bf16.mxu0 %v1190_v1 }
  0x81   : > { %909 = vmatmul.mubr.bf16.gmra.mrb[4].mxu1 %v1043_v27  ;;  %478 = vmatmul.mubr.bf16.gmra.mrb[4].mxu0 %v1043_v27 }
  0x82   : > { %912 = vmatprep.mubr.msk.bf16.mxu1 %vm1189_vm0, %v1188_v0  ;;  %487 = vmatprep.mubr.bf16.mxu0 %v1190_v1 }
  0x89   : > { %913 = vmatmul.mubr.bf16.gmra.mrb[8].mxu1 %v1044_v28  ;;  %488 = vmatmul.mubr.bf16.gmra.mrb[8].mxu0 %v1044_v28 }
  0x8a   : > { %916 = vmatprep.mubr.msk.bf16.mxu1 %vm1189_vm0, %v1188_v0  ;;  %497 = vmatprep.mubr.bf16.mxu0 %v1190_v1 }
  0x91   : > { %917 = vmatmul.mubr.bf16.gmra.mrb[12].mxu1 %v1045_v29  ;;  %498 = vmatmul.mubr.bf16.gmra.mrb[12].mxu0 %v1045_v29 }
  0x92   : > { %920 = vmatprep.mubr.msk.bf16.mxu1 %vm1189_vm0, %v1188_v0  ;;  %507 = vmatprep.mubr.bf16.mxu0 %v1190_v1 }
  0x99   : > { %921 = vmatmul.mubr.bf16.gmra.mrb[16].mxu1 %v1046_v30  ;;  %508 = vmatmul.mubr.bf16.gmra.mrb[16].mxu0 %v1046_v30 }
  0x9a   : > { %924 = vmatprep.mubr.msk.bf16.mxu1 %vm1189_vm0, %v1188_v0  ;;  %517 = vmatprep.mubr.bf16.mxu0 %v1190_v1 }
  0xa1   : > { %925 = vmatmul.mubr.bf16.gmra.mrb[20].mxu1 %v1047_v31  ;;  %518 = vmatmul.mubr.bf16.gmra.mrb[20].mxu0 %v1047_v31 }
  0xa2   : > { %928 = vmatprep.mubr.msk.bf16.mxu1 %vm1189_vm0, %v1188_v0  ;;  %527 = vmatprep.mubr.bf16.mxu0 %v1190_v1 }
  0xa9   : > { %929 = vmatmul.mubr.bf16.gmra.mrb[24].mxu1 %v1048_v32  ;;  %528 = vmatmul.mubr.bf16.gmra.mrb[24].mxu0 %v1048_v32 }
  0xaa   : > { %932 = vmatprep.mubr.msk.bf16.mxu1 %vm1189_vm0, %v1188_v0  ;;  %537 = vmatprep.mubr.bf16.mxu0 %v1190_v1 }
  0xb1   : > { %933 = vmatmul.mubr.bf16.gmra.mrb[28].mxu1 %v1049_v33  ;;  %538 = vmatmul.mubr.bf16.gmra.mrb[28].mxu0 %v1049_v33 }
  0xb2   : > { %936 = vmatprep.mubr.msk.bf16.mxu1 %vm1189_vm0, %v1188_v0  ;;  %547 = vmatprep.mubr.bf16.mxu0 %v1190_v1 }
  0xb9   : > { %937 = vmatmul.mubr.bf16.gmra.mrb[32].mxu1 %v1050_v34  ;;  %548 = vmatmul.mubr.bf16.gmra.mrb[32].mxu0 %v1050_v34 }
 0x14c   : > { %v589_v36 = vpop.f32.mrb[0].mxu1  ;;  %v470_v37 = vpop.f32.mrb[0].mxu0 }
 0x14d   : > { %v906_v38 = vpop.f32.mrb[1].mxu1  ;;  %v665_v39 = vadd.f32 %v1414_v35, %v470_v37  ;;  %v472_v40 = vpop.f32.mrb[1].mxu0 }
 0x14e   : > { %v591_v41 = vpop.f32.mrb[2].mxu1  ;;  %v473_v42 = vpop.f32.mrb[2].mxu0 }
 0x14f   : > { %v907_v43 = vpop.f32.mrb[3].mxu1  ;;  %v475_v44 = vpop.f32.mrb[3].mxu0  ;;  %v666_v47 = vadd.f32 %v1414_v35, %v473_v42 }
 0x150   : > { %v681_v45 = vadd.f32 %v665_v39, %v475_v44 }
 0x154   : > { %v595_v46 = vpop.f32.mrb[4].mxu1  ;;  %v479_v49 = vpop.f32.mrb[4].mxu0 }
 0x155   : > { %v697_v48 = vadd.f32 %v681_v45, %v595_v46  ;;  %v910_v50 = vpop.f32.mrb[5].mxu1  ;;  %v667_v51 = vadd.f32 %v1414_v35, %v479_v49  ;;  %v481_v52 = vpop.f32.mrb[5].mxu0 }
 0x156   : > { %v598_v53 = vpop.f32.mrb[6].mxu1  ;;  %v682_v54 = vadd.f32 %v666_v47, %v481_v52  ;;  %v483_v55 = vpop.f32.mrb[6].mxu0 }
 0x157   : > { %713 = vst [vmem:[%s1420_s9] sm:$0xff] %v697_v48  ;;  %v911_v56 = vpop.f32.mrb[7].mxu1  ;;  %v485_v57 = vpop.f32.mrb[7].mxu0  ;;  %v668_v61 = vadd.f32 %v1414_v35, %v483_v55 }
 0x158   : > { %v698_v58 = vadd.f32 %v682_v54, %v598_v53  ;;  %v683_v59 = vadd.f32 %v667_v51, %v485_v57 }
 0x15a   : > { %714 = vst [vmem:[%s1420_s9 + $0x8] sm:$0xff] %v698_v58 }
 0x15c   : > { %v603_v60 = vpop.f32.mrb[8].mxu1  ;;  %v489_v63 = vpop.f32.mrb[8].mxu0 }
 0x15d   : > { %v699_v62 = vadd.f32 %v683_v59, %v603_v60  ;;  %v914_v0 = vpop.f32.mrb[9].mxu1  ;;  %v669_v1 = vadd.f32 %v1414_v35, %v489_v63  ;;  %v491_v2 = vpop.f32.mrb[9].mxu0 }
 0x15e   : > { %v606_v3 = vpop.f32.mrb[10].mxu1  ;;  %v684_v4 = vadd.f32 %v668_v61, %v491_v2  ;;  %v493_v5 = vpop.f32.mrb[10].mxu0 }
 0x15f   : > { %715 = vst [vmem:[%s1420_s9 + $0x10] sm:$0xff] %v699_v62  ;;  %v915_v6 = vpop.f32.mrb[11].mxu1  ;;  %v495_v7 = vpop.f32.mrb[11].mxu0  ;;  %v670_v11 = vadd.f32 %v1414_v35, %v493_v5 }
 0x160   : > { %v700_v8 = vadd.f32 %v684_v4, %v606_v3  ;;  %v685_v9 = vadd.f32 %v669_v1, %v495_v7 }
 0x162   : > { %716 = vst [vmem:[%s1420_s9 + $0x18] sm:$0xff] %v700_v8 }
 0x164   : > { %v611_v10 = vpop.f32.mrb[12].mxu1  ;;  %v499_v13 = vpop.f32.mrb[12].mxu0 }
 0x165   : > { %v701_v12 = vadd.f32 %v685_v9, %v611_v10  ;;  %v918_v14 = vpop.f32.mrb[13].mxu1  ;;  %v671_v15 = vadd.f32 %v1414_v35, %v499_v13  ;;  %v501_v16 = vpop.f32.mrb[13].mxu0 }
 0x166   : > { %v614_v17 = vpop.f32.mrb[14].mxu1  ;;  %v686_v18 = vadd.f32 %v670_v11, %v501_v16  ;;  %v503_v19 = vpop.f32.mrb[14].mxu0 }
 0x167   : > { %717 = vst [vmem:[%s1420_s9 + $0x20] sm:$0xff] %v701_v12  ;;  %v919_v20 = vpop.f32.mrb[15].mxu1  ;;  %v505_v21 = vpop.f32.mrb[15].mxu0  ;;  %v672_v25 = vadd.f32 %v1414_v35, %v503_v19 }
 0x168   : > { %v702_v22 = vadd.f32 %v686_v18, %v614_v17  ;;  %v687_v23 = vadd.f32 %v671_v15, %v505_v21 }
 0x16a   : > { %718 = vst [vmem:[%s1420_s9 + $0x28] sm:$0xff] %v702_v22 }
 0x16c   : > { %v619_v24 = vpop.f32.mrb[16].mxu1  ;;  %v509_v27 = vpop.f32.mrb[16].mxu0 }
 0x16d   : > { %v703_v26 = vadd.f32 %v687_v23, %v619_v24  ;;  %v922_v28 = vpop.f32.mrb[17].mxu1  ;;  %v673_v29 = vadd.f32 %v1414_v35, %v509_v27  ;;  %v511_v30 = vpop.f32.mrb[17].mxu0 }
 0x16e   : > { %v622_v31 = vpop.f32.mrb[18].mxu1  ;;  %v688_v32 = vadd.f32 %v672_v25, %v511_v30  ;;  %v513_v33 = vpop.f32.mrb[18].mxu0 }
 0x16f   : > { %719 = vst [vmem:[%s1420_s9 + $0x30] sm:$0xff] %v703_v26  ;;  %v923_v34 = vpop.f32.mrb[19].mxu1  ;;  %v515_v36 = vpop.f32.mrb[19].mxu0  ;;  %v674_v40 = vadd.f32 %v1414_v35, %v513_v33 }
 0x170   : > { %v704_v37 = vadd.f32 %v688_v32, %v622_v31  ;;  %v689_v38 = vadd.f32 %v673_v29, %v515_v36 }
 0x172   : > { %720 = vst [vmem:[%s1420_s9 + $0x38] sm:$0xff] %v704_v37 }
 0x174   : > { %v627_v39 = vpop.f32.mrb[20].mxu1  ;;  %v519_v42 = vpop.f32.mrb[20].mxu0 }
 0x175   : > { %v705_v41 = vadd.f32 %v689_v38, %v627_v39  ;;  %v926_v43 = vpop.f32.mrb[21].mxu1  ;;  %v675_v44 = vadd.f32 %v1414_v35, %v519_v42  ;;  %v521_v45 = vpop.f32.mrb[21].mxu0 }
 0x176   : > { %v630_v46 = vpop.f32.mrb[22].mxu1  ;;  %v690_v47 = vadd.f32 %v674_v40, %v521_v45  ;;  %v523_v48 = vpop.f32.mrb[22].mxu0 }
 0x177   : > { %721 = vst [vmem:[%s1420_s9 + $0x40] sm:$0xff] %v705_v41  ;;  %v927_v49 = vpop.f32.mrb[23].mxu1  ;;  %v525_v50 = vpop.f32.mrb[23].mxu0  ;;  %v676_v54 = vadd.f32 %v1414_v35, %v523_v48 }
 0x178   : > { %v706_v51 = vadd.f32 %v690_v47, %v630_v46  ;;  %v691_v52 = vadd.f32 %v675_v44, %v525_v50 }
 0x17a   : > { %722 = vst [vmem:[%s1420_s9 + $0x48] sm:$0xff] %v706_v51 }
 0x17c   : > { %v635_v53 = vpop.f32.mrb[24].mxu1  ;;  %v529_v56 = vpop.f32.mrb[24].mxu0 }
 0x17d   : > { %v707_v55 = vadd.f32 %v691_v52, %v635_v53  ;;  %v930_v57 = vpop.f32.mrb[25].mxu1  ;;  %v677_v58 = vadd.f32 %v1414_v35, %v529_v56  ;;  %v531_v59 = vpop.f32.mrb[25].mxu0 }
 0x17e   : > { %v638_v60 = vpop.f32.mrb[26].mxu1  ;;  %v692_v61 = vadd.f32 %v676_v54, %v531_v59  ;;  %v533_v62 = vpop.f32.mrb[26].mxu0 }
 0x17f   : > { %723 = vst [vmem:[%s1420_s9 + $0x50] sm:$0xff] %v707_v55  ;;  %v931_v63 = vpop.f32.mrb[27].mxu1  ;;  %v535_v0 = vpop.f32.mrb[27].mxu0  ;;  %v678_v4 = vadd.f32 %v1414_v35, %v533_v62 }
 0x180   : > { %v708_v1 = vadd.f32 %v692_v61, %v638_v60  ;;  %v693_v2 = vadd.f32 %v677_v58, %v535_v0 }
 0x182   : > { %724 = vst [vmem:[%s1420_s9 + $0x58] sm:$0xff] %v708_v1 }
 0x184   : > { %v643_v3 = vpop.f32.mrb[28].mxu1  ;;  %v539_v6 = vpop.f32.mrb[28].mxu0 }
 0x185   : > { %v709_v5 = vadd.f32 %v693_v2, %v643_v3  ;;  %v934_v7 = vpop.f32.mrb[29].mxu1  ;;  %v679_v8 = vadd.f32 %v1414_v35, %v539_v6  ;;  %v541_v9 = vpop.f32.mrb[29].mxu0 }
 0x186   : > { %v646_v10 = vpop.f32.mrb[30].mxu1  ;;  %v694_v11 = vadd.f32 %v678_v4, %v541_v9  ;;  %v543_v12 = vpop.f32.mrb[30].mxu0 }
 0x187   : > { %725 = vst [vmem:[%s1420_s9 + $0x60] sm:$0xff] %v709_v5  ;;  %v935_v13 = vpop.f32.mrb[31].mxu1  ;;  %v545_v14 = vpop.f32.mrb[31].mxu0  ;;  %v680_v18 = vadd.f32 %v1414_v35, %v543_v12 }
 0x188   : > { %v710_v15 = vadd.f32 %v694_v11, %v646_v10  ;;  %v695_v16 = vadd.f32 %v679_v8, %v545_v14 }
 0x18a   : > { %726 = vst [vmem:[%s1420_s9 + $0x68] sm:$0xff] %v710_v15 }
 0x18c   : > { %v651_v17 = vpop.f32.mrb[32].mxu1  ;;  %v549_v20 = vpop.f32.mrb[32].mxu0 }
 0x18d   : > { %v711_v19 = vadd.f32 %v695_v16, %v651_v17  ;;  %v938_v21 = vpop.f32.mrb[33].mxu1  ;;  %v550_v22 = vpop.f32.mrb[33].mxu0 }
 0x18e   : > { %v654_v23 = vpop.f32.mrb[34].mxu1  ;;  %v696_v24 = vadd.f32 %v680_v18, %v550_v22  ;;  %v552_v25 = vpop.f32.mrb[34].mxu0 }
 0x18f   : > { %727 = vst [vmem:[%s1420_s9 + $0x70] sm:$0xff] %v711_v19  ;;  %v939_v26 = vpop.f32.mrb[35].mxu1  ;;  %v553_v27 = vpop.f32.mrb[35].mxu0 }
 0x190   : > { %v712_v35 = vadd.f32 %v696_v24, %v654_v23 }
 0x192   : > { %728 = vst [vmem:[%s1420_s9 + $0x78] sm:$0xff] %v712_v35 }
 0x193   : > { %1122 = shalt.err (!%p1119_p11)
}
 0x194   : > { %s1123_s10 = scalar_lea.hbm %s1455_s5, 2048  ;;  %s1127_s20 = scalar_lea.hbm %s1505_s3, 4096 }
 0x195   : > { %p1124_p13 = scmp.ne.s32.totalorder %s1455_s5, %s1123_s10  ;;  %p1128_p12 = scmp.lt.u32.totalorder %s1455_s5, %s1505_s3 }
 0x196   : > { %p1129_p0 = scmp.lt.u32.totalorder %s1127_s20, %s1123_s10  ;;  %p1131_p8 = scmp.lt.u32.totalorder %s1123_s10, %s1455_s5 }
 0x197   : > { %p1125_p2 = pnand %p1124_p13, %p1523_p9 }
 0x198   : > { %p1130_p3 = por %p1129_p0, %p1128_p12 }
 0x199   : > { %p1126_p6 = pneg %p1125_p2 }
 0x19a   : > { %p1132_p10 = por %p1131_p8, %p1130_p3 }
 0x19c   : > { %p1133_p1 = pnand %p1132_p10, %p1126_p6 }
 0x19e   : > { %1136 = shalt.err (!%p1133_p1)
}
 0x19f   : > { %s1192_s4 = smov 128   ;;  %s1193_s9 = smov 256  }
 0x1a0   : > { %s1194_s22 = smov 8  }
 0x1a1   : > { %948 = dma.vmem_to_hbm [thread:$0]  (%p1523_p9), %s1457_s29, 2048, %s1455_s5, %s730_s16, %s1192_s4, %s1193_s9, %s1194_s22  }
 0x1a2 PF: > { %s757_s27 = sand.u32 1, %s1167_s12   ;;  %p1524_p4 = scmp.ne.s32.totalorder %s1513_s25, 0 }
 0x1a3   : > { %p1525_p7 = scmp.ge.s32.totalorder %s1179_s15, 2  ;;  %s758_s30 = scalar_lea.sflag [#allocation4], %s757_s27 }
 0x1a5   : > { %p959_p5 = pnand %p1525_p7, %p1524_p4 }
 0x1a7   : > { %1162 = dma.done.wait (!%p959_p5), %s758_s30, 2048  }
 0x1a8   : > { %1164 = vsyncadd (!%p959_p5), %s758_s30, 4294965248  ;;  %p17_p11 = scmp.ge.s32.totalorder %s1240_s18, 4   ;;  %s1526_s12 = smov %s1171_s13 }
 0x1a9   : > { %s1527_s13 = smov %s1175_s14  ;;  %s1528_s14 = smov %s1252_s21 }
 0x1aa   : > { %s1529_s15 = smov %s1240_s18  ;;  %19 = sbr.rel (!%p17_p11) target bundleno = 6 (0x6), region = 81 }
 0x1b1   :  { %763 = vsyncpa [#allocation3], 1 }
 0x1b2   :  { %765 = vsyncpa [#allocation3 + $0x1], 1 }
 0x1b3   :  { %766 = vsyncpa [#allocation6], 1 }
 0x1b4   :  { %767 = vsyncpa [#allocation4], 1 }
 0x1b5   :  { %769 = vsyncpa [#allocation4 + $0x1], 1 }

</bundles_post_ra>
